<compile_context>
chip_gen: v7x
topology: tpu7x:2x2x1
jax: 0.10.0
libtpu: 0.0.40
codegen_flags: <defaults>
</compile_context>

<pallas_src>
import functools

import jax
import jax.numpy as jnp
from jax import lax
from jax.experimental import pallas as pl
from jax.experimental.pallas import tpu as pltpu

NUM_OBS = 34
NUM_ACTIONS = 8
HIDDEN = 128
OBS_PAD = 64      # zero-pad obs K-dim 34 -> 64 (aligned contraction for matmul 1)
SUB_ROWS = 256    # in-kernel row sub-tile: keeps f32 accumulators in vregs


def _round_up(n, m):
    return ((n + m - 1) // m) * m


def _cdiv(a, b):
    return (a + b - 1) // b


def _make_kernel(sub, n_sub):
    """Kernel specialized on the (static) sub-tile size and count."""

    def dqn_kernel(x_ref, w1_ref, b1_ref, w2_ref, b2_ref, w3_ref, b3_ref,
                   o_ref, xpad_ref):
        # Zero the padded K columns once per grid step; columns [0, NUM_OBS) are
        # rewritten below for every row sub-tile, so the pad stays zero.
        xpad_ref[:, NUM_OBS:] = jnp.zeros((sub, OBS_PAD - NUM_OBS), jnp.bfloat16)

        def chunk(r0):
            # Cast the f32 obs rows to bf16 into the zero-padded staging buffer
            # (VPU + masked stores; no separate XLA pre-pass over HBM).
            xpad_ref[:, :NUM_OBS] = x_ref[pl.ds(r0, sub), :].astype(jnp.bfloat16)
            # Layer 1: Linear(34 -> 128) + ReLU (bf16 operands, f32 MXU acc)
            h1 = jnp.dot(xpad_ref[...], w1_ref[...],
                         preferred_element_type=jnp.float32)
            h1 = jnp.maximum(h1 + b1_ref[...], 0.0).astype(jnp.bfloat16)
            # Layer 2: Linear(128 -> 128) + ReLU
            h2 = jnp.dot(h1, w2_ref[...], preferred_element_type=jnp.float32)
            h2 = jnp.maximum(h2 + b2_ref[...], 0.0).astype(jnp.bfloat16)
            # Layer 3: Linear(128 -> 8), stored directly into the narrow output
            q = jnp.dot(h2, w3_ref[...],
                        preferred_element_type=jnp.float32) + b3_ref[...]
            o_ref[pl.ds(r0, sub), :] = q.astype(o_ref.dtype)

        if n_sub == 1:
            chunk(0)
        else:
            def body(i, carry):
                chunk(pl.multiple_of(i * sub, 16))
                return carry
            lax.fori_loop(0, n_sub, body, 0, unroll=True)

    return dqn_kernel


def pack_params(params):
    """Pad + cast logical (in,out)/(1,out) params into the kernel layout (one-time)."""
    w1, b1, w2, b2, w3, b3 = params
    w1p = jnp.zeros((OBS_PAD, HIDDEN), jnp.bfloat16).at[:NUM_OBS, :].set(
        w1.astype(jnp.bfloat16))
    return (w1p,
            b1.astype(jnp.float32),
            w2.astype(jnp.bfloat16),
            b2.astype(jnp.float32),
            w3.astype(jnp.bfloat16),      # (128, 8) — no output padding needed
            b3.astype(jnp.float32))       # (1, 8)


@functools.partial(jax.jit, static_argnames=("tb",))
def dqn_forward(x, packed_params, tb=2048):
    """x: (B, NUM_OBS) f32.  Returns (B, NUM_ACTIONS) f32 Q-values."""
    w1p, b1, w2p, b2, w3p, b3 = packed_params
    B = x.shape[0]

    # ---- batch tiling -------------------------------------------------------
    n_tiles = max(1, _cdiv(B, tb))
    if B >= 32:
        n_tiles = max(2, n_tiles)        # >= 2 grid steps: v7x megacore engages
        n_tiles += n_tiles % 2           # even split across the two TensorCores
    tb0 = _round_up(_cdiv(B, n_tiles), 16)        # bf16 vreg = 16 sublanes
    n_sub = max(1, _cdiv(tb0, SUB_ROWS))          # in-kernel row sub-tiles
    sub = _round_up(_cdiv(tb0, n_sub), 16)
    TB = sub * n_sub
    grid = (_cdiv(B, TB),)               # ragged last block: padded rows dropped

    const = lambda i: (0, 0)             # weight-stationary: same block every step
    batch = lambda i: (i, 0)

    cost = pl.CostEstimate(
        flops=2 * B * (OBS_PAD * HIDDEN + HIDDEN * HIDDEN + HIDDEN * NUM_ACTIONS),
        transcendentals=0,
        bytes_accessed=(B * NUM_OBS * 4
                        + (w1p.size + w2p.size + w3p.size) * 2
                        + (b1.size + b2.size + b3.size) * 4
                        + B * NUM_ACTIONS * 4),
    )

    out = pl.pallas_call(
        _make_kernel(sub, n_sub),
        out_shape=jax.ShapeDtypeStruct((B, NUM_ACTIONS), jnp.float32),
        grid=grid,
        in_specs=[
            pl.BlockSpec((TB, NUM_OBS), batch),        # x in natural layout
            pl.BlockSpec((OBS_PAD, HIDDEN), const),
            pl.BlockSpec((1, HIDDEN), const),
            pl.BlockSpec((HIDDEN, HIDDEN), const),
            pl.BlockSpec((1, HIDDEN), const),
            pl.BlockSpec((HIDDEN, NUM_ACTIONS), const),
            pl.BlockSpec((1, NUM_ACTIONS), const),
        ],
        out_specs=pl.BlockSpec((TB, NUM_ACTIONS), batch),
        scratch_shapes=[pltpu.VMEM((sub, OBS_PAD), jnp.bfloat16)],
        compiler_params=pltpu.CompilerParams(
            dimension_semantics=("parallel",),
        ),
        cost_estimate=cost,
    )(x, w1p, b1, w2p, b2, w3p, b3)

    return out                           # already (B, 8) f32 — no post-slice pass


def init_params(key):
    """Deterministic init mirroring PyTorch nn.Linear default (uniform +/- 1/sqrt(fan_in)).
    Weights are created as (out, in) like PyTorch, then transposed to (in, out)."""
    def linear_init(key, fan_in, fan_out):
        kw, kb = jax.random.split(key)
        bound = 1.0 / jnp.sqrt(fan_in)
        w = jax.random.uniform(kw, (fan_out, fan_in), jnp.float32, -bound, bound)
        b = jax.random.uniform(kb, (1, fan_out), jnp.float32, -bound, bound)
        return w.T, b  # (in, out), (1, out)

    k1, k2, k3 = jax.random.split(key, 3)
    w1, b1 = linear_init(k1, NUM_OBS, HIDDEN)
    w2, b2 = linear_init(k2, HIDDEN, HIDDEN)
    w3, b3 = linear_init(k3, HIDDEN, NUM_ACTIONS)
    return (w1, b1, w2, b2, w3, b3)


def dqn_ref(x, params):
    """Pure-JAX reference using the same bf16-weight / f32-accumulate recipe."""
    w1, b1, w2, b2, w3, b3 = params
    xb = x.astype(jnp.bfloat16)
    h1 = jnp.dot(xb, w1.astype(jnp.bfloat16), preferred_element_type=jnp.float32) + b1
    h1 = jnp.maximum(h1, 0.0).astype(jnp.bfloat16)
    h2 = jnp.dot(h1, w2.astype(jnp.bfloat16), preferred_element_type=jnp.float32) + b2
    h2 = jnp.maximum(h2, 0.0).astype(jnp.bfloat16)
    return jnp.dot(h2, w3.astype(jnp.bfloat16), preferred_element_type=jnp.float32) + b3


if __name__ == "__main__":
    key = jax.random.PRNGKey(0)
    kx, kp, kx2, kx3 = jax.random.split(key, 4)
    params = init_params(kp)
    packed = pack_params(params)

    # Small batch (2): single grid step, single row sub-tile.
    x = jax.random.normal(kx, (2, NUM_OBS), jnp.float32)
    out = jax.block_until_ready(dqn_forward(x, packed))
    ref = dqn_ref(x, params)
    assert out.shape == (2, NUM_ACTIONS)
    assert jnp.allclose(out, ref, atol=1e-2, rtol=1e-2), float(jnp.max(jnp.abs(out - ref)))

    # Non-multiple batch: 2 grid steps (megacore path), ragged last block.
    x2 = jax.random.normal(kx2, (200, NUM_OBS), jnp.float32)
    out2 = jax.block_until_ready(dqn_forward(x2, packed))
    ref2 = dqn_ref(x2, params)
    assert out2.shape == (200, NUM_ACTIONS)
    assert jnp.allclose(out2, ref2, atol=1e-2, rtol=1e-2), float(jnp.max(jnp.abs(out2 - ref2)))

    # Larger batch exercising the in-kernel row sub-tiling (n_sub > 1) + ragged tail.
    x3 = jax.random.normal(kx3, (1000, NUM_OBS), jnp.float32)
    out3 = jax.block_until_ready(dqn_forward(x3, packed))
    ref3 = dqn_ref(x3, params)
    assert out3.shape == (1000, NUM_ACTIONS)
    assert jnp.allclose(out3, ref3, atol=1e-2, rtol=1e-2), float(jnp.max(jnp.abs(out3 - ref3)))

    print("KERNEL_OK")
</pallas_src>

<mosaic_0001>
module attributes {stable_mosaic.version = 11 : i64} {
  func.func @dqn_kernel(%arg0: i32, %arg1: memref<16x34xf32, #tpu.memory_space<vmem>>, %arg2: memref<64x128xbf16, #tpu.memory_space<vmem>>, %arg3: memref<1x128xf32, #tpu.memory_space<vmem>>, %arg4: memref<128x128xbf16, #tpu.memory_space<vmem>>, %arg5: memref<1x128xf32, #tpu.memory_space<vmem>>, %arg6: memref<128x8xbf16, #tpu.memory_space<vmem>>, %arg7: memref<1x8xf32, #tpu.memory_space<vmem>>, %arg8: memref<16x8xf32, #tpu.memory_space<vmem>>, %arg9: memref<16x64xbf16, #tpu.memory_space<vmem>>) attributes {dimension_semantics = [#tpu.dimension_semantics<parallel>], iteration_bounds = array<i64: 1>, scalar_prefetch = 0 : i64, scratch_operands = 1 : i64, tpu.core_type = #tpu.core_type<tc>, window_params = [{transform_indices = @transform_0, window_bounds = array<i64: 16, 34>}, {pipeline_mode = #tpu.pipeline_mode<synchronous>, transform_indices = @transform_1, window_bounds = array<i64: 64, 128>}, {pipeline_mode = #tpu.pipeline_mode<synchronous>, transform_indices = @transform_2, window_bounds = array<i64: 1, 128>}, {pipeline_mode = #tpu.pipeline_mode<synchronous>, transform_indices = @transform_3, window_bounds = array<i64: 128, 128>}, {pipeline_mode = #tpu.pipeline_mode<synchronous>, transform_indices = @transform_4, window_bounds = array<i64: 1, 128>}, {pipeline_mode = #tpu.pipeline_mode<synchronous>, transform_indices = @transform_5, window_bounds = array<i64: 128, 8>}, {pipeline_mode = #tpu.pipeline_mode<synchronous>, transform_indices = @transform_6, window_bounds = array<i64: 1, 8>}, {transform_indices = @transform_7, window_bounds = array<i64: 16, 8>}]} {
    %cst = arith.constant 0.000000e+00 : bf16
    %0 = vector.broadcast %cst : bf16 to vector<16x30xbf16>
    %c0 = arith.constant 0 : index
    %c34 = arith.constant 34 : index
    %1 = vector.load %arg9[%c0, %c34] : memref<16x64xbf16, #tpu.memory_space<vmem>>, vector<16x30xbf16>
    tpu.vector_store %arg9[%c0, %c34], %0 {strides = array<i32>} : memref<16x64xbf16, #tpu.memory_space<vmem>>, vector<16x30xbf16>,
    %c0_0 = arith.constant 0 : index
    %c0_1 = arith.constant 0 : index
    %2 = vector.load %arg1[%c0_0, %c0_1] : memref<16x34xf32, #tpu.memory_space<vmem>>, vector<16x34xf32>
    %3 = arith.truncf %2 : vector<16x34xf32> to vector<16x34xbf16>
    %c0_2 = arith.constant 0 : index
    %c0_3 = arith.constant 0 : index
    %4 = vector.load %arg9[%c0_2, %c0_3] : memref<16x64xbf16, #tpu.memory_space<vmem>>, vector<16x34xbf16>
    tpu.vector_store %arg9[%c0_2, %c0_3], %3 {strides = array<i32>} : memref<16x64xbf16, #tpu.memory_space<vmem>>, vector<16x34xbf16>,
    %c0_4 = arith.constant 0 : index
    %c0_5 = arith.constant 0 : index
    %5 = vector.load %arg9[%c0_4, %c0_5] : memref<16x64xbf16, #tpu.memory_space<vmem>>, vector<16x64xbf16>
    %c0_6 = arith.constant 0 : index
    %c0_7 = arith.constant 0 : index
    %6 = vector.load %arg2[%c0_6, %c0_7] : memref<64x128xbf16, #tpu.memory_space<vmem>>, vector<64x128xbf16>
    %cst_8 = arith.constant dense<0.000000e+00> : vector<16x128xf32>
    %7 = tpu.matmul %5, %6, %cst_8 {dimension_numbers = #tpu.dot_dimension_numbers<[1], [0], [0], [1], [0, 0, 1, 1], [], []>} : vector<16x64xbf16>, vector<64x128xbf16>, vector<16x128xf32> -> vector<16x128xf32>
    %c0_9 = arith.constant 0 : index
    %c0_10 = arith.constant 0 : index
    %8 = vector.load %arg3[%c0_9, %c0_10] : memref<1x128xf32, #tpu.memory_space<vmem>>, vector<1x128xf32>
    %9 = vector.broadcast %8 : vector<1x128xf32> to vector<16x128xf32>
    %10 = arith.addf %7, %9 : vector<16x128xf32>
    %cst_11 = arith.constant 0.000000e+00 : f32
    %11 = vector.broadcast %cst_11 : f32 to vector<16x128xf32>
    %12 = arith.maximumf %10, %11 : vector<16x128xf32>
    %13 = arith.truncf %12 : vector<16x128xf32> to vector<16x128xbf16>
    %c0_12 = arith.constant 0 : index
    %c0_13 = arith.constant 0 : index
    %14 = vector.load %arg4[%c0_12, %c0_13] : memref<128x128xbf16, #tpu.memory_space<vmem>>, vector<128x128xbf16>
    %cst_14 = arith.constant dense<0.000000e+00> : vector<16x128xf32>
    %15 = tpu.matmul %13, %14, %cst_14 {dimension_numbers = #tpu.dot_dimension_numbers<[1], [0], [0], [1], [0, 0, 1, 1], [], []>} : vector<16x128xbf16>, vector<128x128xbf16>, vector<16x128xf32> -> vector<16x128xf32>
    %c0_15 = arith.constant 0 : index
    %c0_16 = arith.constant 0 : index
    %16 = vector.load %arg5[%c0_15, %c0_16] : memref<1x128xf32, #tpu.memory_space<vmem>>, vector<1x128xf32>
    %17 = vector.broadcast %16 : vector<1x128xf32> to vector<16x128xf32>
    %18 = arith.addf %15, %17 : vector<16x128xf32>
    %cst_17 = arith.constant 0.000000e+00 : f32
    %19 = vector.broadcast %cst_17 : f32 to vector<16x128xf32>
    %20 = arith.maximumf %18, %19 : vector<16x128xf32>
    %21 = arith.truncf %20 : vector<16x128xf32> to vector<16x128xbf16>
    %c0_18 = arith.constant 0 : index
    %c0_19 = arith.constant 0 : index
    %22 = vector.load %arg6[%c0_18, %c0_19] : memref<128x8xbf16, #tpu.memory_space<vmem>>, vector<128x8xbf16>
    %cst_20 = arith.constant dense<0.000000e+00> : vector<16x8xf32>
    %23 = tpu.matmul %21, %22, %cst_20 {dimension_numbers = #tpu.dot_dimension_numbers<[1], [0], [0], [1], [0, 0, 1, 1], [], []>} : vector<16x128xbf16>, vector<128x8xbf16>, vector<16x8xf32> -> vector<16x8xf32>
    %c0_21 = arith.constant 0 : index
    %c0_22 = arith.constant 0 : index
    %24 = vector.load %arg7[%c0_21, %c0_22] : memref<1x8xf32, #tpu.memory_space<vmem>>, vector<1x8xf32>
    %25 = vector.broadcast %24 : vector<1x8xf32> to vector<16x8xf32>
    %26 = arith.addf %23, %25 : vector<16x8xf32>
    %c0_23 = arith.constant 0 : index
    %c0_24 = arith.constant 0 : index
    %27 = vector.load %arg8[%c0_23, %c0_24] : memref<16x8xf32, #tpu.memory_space<vmem>>, vector<16x8xf32>
    tpu.vector_store %arg8[%c0_23, %c0_24], %26 {strides = array<i32>} : memref<16x8xf32, #tpu.memory_space<vmem>>, vector<16x8xf32>,
    return
  }
  func.func @transform_0(%arg0: i32) -> (i32, i32) {
    %c0_i32 = arith.constant 0 : i32
    %c0_i32_0 = arith.constant 0 : i32
    return %arg0, %c0_i32 : i32, i32
  }
  func.func @transform_1(%arg0: i32) -> (i32, i32) {
    %c0_i32 = arith.constant 0 : i32
    %c0_i32_0 = arith.constant 0 : i32
    %c0_i32_1 = arith.constant 0 : i32
    return %c0_i32, %c0_i32_0 : i32, i32
  }
  func.func @transform_2(%arg0: i32) -> (i32, i32) {
    %c0_i32 = arith.constant 0 : i32
    %c0_i32_0 = arith.constant 0 : i32
    %c0_i32_1 = arith.constant 0 : i32
    return %c0_i32, %c0_i32_0 : i32, i32
  }
  func.func @transform_3(%arg0: i32) -> (i32, i32) {
    %c0_i32 = arith.constant 0 : i32
    %c0_i32_0 = arith.constant 0 : i32
    %c0_i32_1 = arith.constant 0 : i32
    return %c0_i32, %c0_i32_0 : i32, i32
  }
  func.func @transform_4(%arg0: i32) -> (i32, i32) {
    %c0_i32 = arith.constant 0 : i32
    %c0_i32_0 = arith.constant 0 : i32
    %c0_i32_1 = arith.constant 0 : i32
    return %c0_i32, %c0_i32_0 : i32, i32
  }
  func.func @transform_5(%arg0: i32) -> (i32, i32) {
    %c0_i32 = arith.constant 0 : i32
    %c0_i32_0 = arith.constant 0 : i32
    %c0_i32_1 = arith.constant 0 : i32
    return %c0_i32, %c0_i32_0 : i32, i32
  }
  func.func @transform_6(%arg0: i32) -> (i32, i32) {
    %c0_i32 = arith.constant 0 : i32
    %c0_i32_0 = arith.constant 0 : i32
    %c0_i32_1 = arith.constant 0 : i32
    return %c0_i32, %c0_i32_0 : i32, i32
  }
  func.func @transform_7(%arg0: i32) -> (i32, i32) {
    %c0_i32 = arith.constant 0 : i32
    %c0_i32_0 = arith.constant 0 : i32
    return %arg0, %c0_i32 : i32, i32
  }
}

</mosaic_0001>

<bundles_post_ra>
// kernel: dqn_forward.1
= control target key start
LH: loop header
LB: loop body
LE: loop exit
PB: predicated region body
PF: predicated region fallthrough
CT: control target
= control target key end

     0   :  { %12 = vsyncpa [#allocation4], 0  ;;  %s722_s0 = inlined_call_operand.vmem [shape: f32[2,34], index: 0, kind: input, shape index: {}]   ;;  %s723_s1 = inlined_call_operand.hbm [shape: bf16[64,128], index: 1, kind: input, shape index: {}]   ;;  %s724_s2 = inlined_call_operand.vmem [shape: f32[1,128], index: 2, kind: input, shape index: {}]   ;;  %s725_s3 = inlined_call_operand.vmem [shape: bf16[128,128], index: 3, kind: input, shape index: {}]   ;;  %s726_s4 = inlined_call_operand.vmem [shape: f32[1,128], index: 4, kind: input, shape index: {}]   ;;  %s727_s5 = inlined_call_operand.vmem [shape: bf16[128,8], index: 5, kind: input, shape index: {}]   ;;  %s728_s6 = inlined_call_operand.vmem [shape: f32[1,8], index: 6, kind: input, shape index: {}]   ;;  %s729_s7 = inlined_call_operand.hbm [shape: f32[2,8], index: 7, kind: output, shape index: {}]  }
   0x1   :  { %13 = vsyncpa [#allocation5], 0  ;;  %s560_s24 = smov [#allocation3]   ;;  %s512_s28 = scalar_lea.hbm %s723_s1, 512 }
   0x2   :  { %s21_s25 = sshll.u32 %s560_s24, 4  ;;  %p513_p0 = scmp.ne.s32.totalorder %s723_s1, %s512_s28  ;;  %s22_s25 = int_to_ptr.vmem [resolvable:$true] %s21_s25 }
   0x3   :  { %p516_p1 = scmp.lt.u32.totalorder %s512_s28, %s723_s1 }
   0x5   :  { %p518_p2 = pnand %p516_p1, %p513_p0 }
   0x7   :  { %521 = shalt.err (!%p518_p2)
}
   0x8   :  { %s522_s10 = scalar_lea.vmem %s22_s25, 512  ;;  %p527_p4 = scmp.lt.s32.totalorder %s22_s25, %s22_s25 }
   0x9   :  { %p523_p3 = scmp.ne.s32.totalorder %s22_s25, %s522_s10  ;;  %p528_p5 = scmp.lt.s32.totalorder %s522_s10, %s522_s10 }
   0xb   :  { %p529_p6 = por %p528_p5, %p527_p4 }
   0xd   :  { %p530_p7 = pnand %p529_p6, %p523_p3 }
   0xf   :  { %533 = shalt.err (!%p530_p7)
}
  0x10   :  { %s561_s11 = smov 64   ;;  %s562_s12 = smov 4  }
  0x11   :  { %27 = dma.hbm_to_vmem [thread:$0]  %s723_s1, 512, %s22_s25, [#allocation4], %s561_s11, %s561_s11, %s562_s12  }
  0x12   :  { %556 = dma.done.wait [#allocation4], 512  }
  0x13   :  { %557 = vsyncadd [#allocation4], 4294966784  ;;  %vm42_vm0 = vcmask 523536   ;;  %v563_v0 = vmov 0.0   ;;  %vm564_vm1 = vmmov 0   ;;  %v565_v1 = vmov 0  }
  0x14   :  { %431 = vmatprep.subr.bf16.mxu0 %v563_v0  ;;  %439 = vmatprep.mubr.msk.bf16.mxu0 %vm564_vm1, %v563_v0  ;;  %43 = vst.msk [vmem:[#allocation2] sm:$0xff] %vm42_vm0, %v565_v1  ;;  %v492_v2 = vld [vmem:[#allocation3] sm:$0xff]   ;;  %v493_v3 = vld [vmem:[#allocation3 + $0x8] sm:$0xff]   ;;  %v44_v4 = vld [vmem:[%s722_s0] sm:$0xff]  ;;  %vm47_vm2 = vcmask 277504   ;;  %vm89_vm3 = vcmask 523264  }
  0x15   :  { %443 = vmatprep.subr.bf16.mxu1 %v563_v0  ;;  %459 = vmatprep.mubr.msk.bf16.mxu1 %vm564_vm1, %v563_v0  ;;  %v45_v5 = vld [vmem:[%s722_s0 + $0x8] sm:$0xff]  ;;  %v496_v7 = vld [vmem:[%s725_s3] sm:$0xff]   ;;  %v494_v8 = vld [vmem:[#allocation3 + $0x10] sm:$0xff]   ;;  %vm364_vm4 = vcmask 64512  }
  0x16   :  { %432 = vmatpush3.bf16.msra.mxu0 %v492_v2  ;;  %v46_v6 = vpack.c.bf16 %v45_v5, %v44_v4  ;;  %444 = vmatpush3.bf16.msra.mxu1 %v496_v7  ;;  %v497_v9 = vld [vmem:[%s725_s3 + $0x8] sm:$0xff]   ;;  %v495_v10 = vld [vmem:[#allocation3 + $0x18] sm:$0xff]   ;;  %v498_v11 = vld [vmem:[%s725_s3 + $0x10] sm:$0xff]  }
  0x17   :  { %433 = vmatprep.subr.bf16.mxu0 %v563_v0  ;;  %445 = vmatprep.subr.bf16.mxu1 %v563_v0  ;;  %v499_v12 = vld [vmem:[%s725_s3 + $0x18] sm:$0xff]   ;;  %v500_v14 = vld [vmem:[%s725_s3 + $0x20] sm:$0xff]   ;;  %v501_v15 = vld [vmem:[%s725_s3 + $0x28] sm:$0xff]  }
  0x18   :  { %48 = vst.msk [vmem:[#allocation2] sm:$0xff] %vm47_vm2, %v46_v6  ;;  %v502_v16 = vld [vmem:[%s725_s3 + $0x30] sm:$0xff]   ;;  %v503_v17 = vld [vmem:[%s725_s3 + $0x38] sm:$0xff]   ;;  %v504_v18 = vld [vmem:[%s727_s5] sm:$0xff]  }
  0x19   :  { %v505_v19 = vld [vmem:[%s727_s5 + $0x8] sm:$0xff]   ;;  %v506_v20 = vld [vmem:[%s727_s5 + $0x10] sm:$0xff]   ;;  %v507_v21 = vld [vmem:[%s727_s5 + $0x18] sm:$0xff]  }
  0x1a   :  { %434 = vmatpush3.bf16.msra.mxu0 %v493_v3  ;;  %446 = vmatpush3.bf16.msra.mxu1 %v497_v9  ;;  %v508_v22 = vld [vmem:[%s727_s5 + $0x20] sm:$0xff]   ;;  %v509_v23 = vld [vmem:[%s727_s5 + $0x28] sm:$0xff]   ;;  %v510_v34 = vld [vmem:[%s727_s5 + $0x30] sm:$0xff]  }
  0x1b   :  { %435 = vmatprep.subr.bf16.mxu0 %v563_v0  ;;  %447 = vmatprep.subr.bf16.mxu1 %v563_v0  ;;  %v384_v24 = vld [vmem:[%s724_s2] ss:$0 sm:$0xff]  ;;  %v511_v35 = vld [vmem:[%s727_s5 + $0x38] sm:$0xff]  }
  0x1c   :  { %v390_v36 = vld [vmem:[%s726_s4] ss:$0 sm:$0xff] }
  0x1d   :  { %v399_v46 = vld [vmem:[%s728_s6] ss:$0 sm:$0xff] }
  0x1e   :  { %436 = vmatpush3.bf16.msra.mxu0 %v494_v8  ;;  %448 = vmatpush3.bf16.msra.mxu1 %v498_v11 }
  0x1f   :  { %437 = vmatprep.subr.bf16.mxu0 %v563_v0  ;;  %v49_v13 = vld [vmem:[#allocation2] sm:$0xff]  ;;  %449 = vmatprep.subr.bf16.mxu1 %v563_v0 }
  0x22   :  { %438 = vmatpush3.bf16.msra.mxu0 %v495_v10  ;;  %450 = vmatpush3.bf16.msra.mxu1 %v499_v12 }
  0x23   :  { %463 = vmatprep.subr.bf16.mxu0 %v563_v0  ;;  %451 = vmatprep.subr.bf16.mxu1 %v563_v0 }
  0x25   :  { %440 = vmatmul.mubr.msk.bf16.vlgmr.msra.gmra.mrb[0].mxu0 %vm89_vm3, %v49_v13 }
  0x26   :  { %479 = vmatprep.mubr.msk.bf16.mxu0 %vm564_vm1, %v563_v0  ;;  %452 = vmatpush3.bf16.msra.mxu1 %v500_v14 }
  0x27   :  { %453 = vmatprep.subr.bf16.mxu1 %v563_v0  ;;  %464 = vmatpush3.bf16.msra.mxu0 %v504_v18 }
  0x28   :  { %465 = vmatprep.subr.bf16.mxu0 %v563_v0 }
  0x2a   :  { %454 = vmatpush3.bf16.msra.mxu1 %v501_v15 }
  0x2b   :  { %455 = vmatprep.subr.bf16.mxu1 %v563_v0  ;;  %466 = vmatpush3.bf16.msra.mxu0 %v505_v19 }
  0x2c   :  { %467 = vmatprep.subr.bf16.mxu0 %v563_v0 }
  0x2e   :  { %456 = vmatpush3.bf16.msra.mxu1 %v502_v16 }
  0x2f   :  { %457 = vmatprep.subr.bf16.mxu1 %v563_v0  ;;  %468 = vmatpush3.bf16.msra.mxu0 %v506_v20 }
  0x30   :  { %469 = vmatprep.subr.bf16.mxu0 %v563_v0 }
  0x32   :  { %458 = vmatpush3.bf16.msra.mxu1 %v503_v17 }
  0x33   :  { %470 = vmatpush3.bf16.msra.mxu0 %v507_v21 }
  0x34   :  { %471 = vmatprep.subr.bf16.mxu0 %v563_v0 }
  0x37   :  { %472 = vmatpush3.bf16.msra.mxu0 %v508_v22 }
  0x38   :  { %473 = vmatprep.subr.bf16.mxu0 %v563_v0 }
  0x3b   :  { %474 = vmatpush3.bf16.msra.mxu0 %v509_v23 }
  0x3c   :  { %475 = vmatprep.subr.bf16.mxu0 %v563_v0 }
  0x3f   :  { %476 = vmatpush3.bf16.msra.mxu0 %v510_v34 }
  0x40   :  { %477 = vmatprep.subr.bf16.mxu0 %v563_v0 }
  0x43   :  { %478 = vmatpush3.bf16.msra.mxu0 %v511_v35 }
  0xf8   :  { %v127_v25 = vpop.f32.mrb[0].mxu0 }
  0xf9   :  { %v128_v26 = vadd.f32 %v384_v24, %v127_v25  ;;  %v441_v27 = vpop.f32.mrb[1].mxu0 }
  0xfa   :  { %v130_v28 = vpop.f32.mrb[2].mxu0 }
  0xfb   :  { %v131_v29 = vadd.f32 %v384_v24, %v130_v28  ;;  %v442_v30 = vpop.f32.mrb[3].mxu0  ;;  %v134_v31 = vmax.f32 %v128_v26, 0.0 }
  0xfd   :  { %v135_v32 = vmax.f32 %v131_v29, 0.0 }
  0xff   :  { %v136_v33 = vpack.c.bf16 %v135_v32, %v134_v31 }
 0x101   :  { %460 = vmatmul.mubr.bf16.vlgmr.msra.gmra.mrb[0].mxu1 %v136_v33 }
 0x1d4   :  { %v242_v37 = vpop.f32.mrb[0].mxu1 }
 0x1d5   :  { %v243_v38 = vadd.f32 %v390_v36, %v242_v37  ;;  %v461_v39 = vpop.f32.mrb[1].mxu1 }
 0x1d6   :  { %v245_v40 = vpop.f32.mrb[2].mxu1 }
 0x1d7   :  { %v246_v41 = vadd.f32 %v390_v36, %v245_v40  ;;  %v462_v42 = vpop.f32.mrb[3].mxu1  ;;  %v249_v43 = vmax.f32 %v243_v38, 0.0 }
 0x1d9   :  { %v250_v44 = vmax.f32 %v246_v41, 0.0 }
 0x1db   :  { %v251_v45 = vpack.c.bf16 %v250_v44, %v249_v43 }
 0x1dd   :  { %480 = vmatmul.mubr.bf16.vlgmr.msra.gmra.mrb[4].mxu0 %v251_v45 }
 0x2b0   :  { %v357_v47 = vpop.f32.mrb[4].mxu0 }
 0x2b1   :  { %v358_v48 = vadd.f32 %v399_v46, %v357_v47  ;;  %v481_v49 = vpop.f32.mrb[5].mxu0 }
 0x2b2   :  { %v360_v50 = vpop.f32.mrb[6].mxu0 }
 0x2b3   :  { %365 = vst.msk [vmem:[#allocation6] sm:$0xff] %vm364_vm4, %v358_v48  ;;  %v361_v51 = vadd.f32 %v399_v46, %v360_v50  ;;  %v482_v52 = vpop.f32.mrb[7].mxu0 }
 0x2b5   :  { %366 = vst.msk [vmem:[#allocation6 + $0x8] sm:$0xff] %vm364_vm4, %v361_v51 }
 0x2b6   :  { %371 = vsyncadd [#allocation5], 224  ;;  %s566_s4 = smov [#allocation6]  }
 0x2b7   :  { %s372_s5 = sshll.u32 %s566_s4, 4  ;;  %s373_s5 = int_to_ptr.vmem [resolvable:$true] %s372_s5 }
 0x2b8   :  { %s534_s28 = scalar_lea.vmem %s373_s5, 32  ;;  %s538_s29 = scalar_lea.vmem %s373_s5, 256 }
 0x2b9   :  { %p535_p8 = scmp.ne.s32.totalorder %s373_s5, %s534_s28  ;;  %p539_p9 = scmp.lt.s32.totalorder %s373_s5, %s373_s5 }
 0x2ba   :  { %p540_p10 = scmp.lt.s32.totalorder %s538_s29, %s534_s28 }
 0x2bc   :  { %p541_p11 = por %p540_p10, %p539_p9 }
 0x2be   :  { %p542_p12 = pnand %p541_p11, %p535_p8 }
 0x2c0   :  { %545 = shalt.err (!%p542_p12)
}
 0x2c1   :  { %s546_s8 = scalar_lea.hbm %s729_s7, 32 }
 0x2c2   :  { %p547_p13 = scmp.ne.s32.totalorder %s729_s7, %s546_s8  ;;  %p550_p0 = scmp.lt.u32.totalorder %s546_s8, %s729_s7 }
 0x2c4   :  { %p552_p1 = pnand %p550_p0, %p547_p13 }
 0x2c6   :  { %555 = shalt.err (!%p552_p1)
}
 0x2c7   :  { %s567_s13 = smov 32   ;;  %s568_s14 = smov 2  }
 0x2c8   :  { %378 = dma.vmem_to_hbm [thread:$0]  %s373_s5, 32, %s729_s7, [#allocation5], %s567_s13, %s567_s13, %s568_s14  }
 0x2c9   :  { %558 = dma.done.wait [#allocation5], 256  }
 0x2ca   :  { %559 = vsyncadd [#allocation5], 4294967040 }
 0x2cb   :  { %382 = vsyncpa [#allocation4], 1 }
 0x2cc   :  { %383 = vsyncpa [#allocation5], 1 }

</bundles_post_ra>
